<compile_context>
chip_gen: v7x
topology: tpu7x:2x2x1
jax: 0.10.0
libtpu: 0.0.40
codegen_flags: <defaults>
</compile_context>

<pallas_src>
import functools
import math

import jax
import jax.numpy as jnp
from jax import lax
from jax.experimental import pallas as pl
from jax.experimental.pallas import tpu as pltpu


def _cdiv(a, b):
    return -(-a // b)


def _round_up(a, b):
    return _cdiv(a, b) * b


# ----------------------------------------------------------------------------
# Device-dependent configuration of the scoring stream
# ----------------------------------------------------------------------------
def _scoring_config(num_entities):
    """(n_parallel, tile_e, tiles_per_part, e_pad, is_v7x) for the scoring kernel."""
    kind = ""
    try:
        kind = jax.devices()[0].device_kind.lower()
    except Exception:
        pass
    is_v7x = "v7" in kind
    if is_v7x:
        n_parallel, target_tile = 2, 2048      # 2 TCs, 64 MiB VMEM cap
    else:
        n_parallel, target_tile = 1, 4096      # 1 TC, HBM-bound -> bigger tiles
    per_part = _cdiv(num_entities, n_parallel)
    tile_e = max(128, min(target_tile, _round_up(per_part, 128)))
    tiles_per_part = _cdiv(per_part, tile_e)
    e_pad = n_parallel * tiles_per_part * tile_e
    return n_parallel, tile_e, tiles_per_part, e_pad, is_v7x


def prepare_entity_table(ent_emb_f32):
    """One-time (load-time) prep of the frozen entity table:
      * bf16 copy (E, 2d) for head-row gathers (halves gather HBM traffic),
      * transposed + entity-padded bf16 copy (2d, e_pad) for the scoring stream
        (lane-dense tiles along the entity axis, no per-forward pad/cast)."""
    E, twod = ent_emb_f32.shape
    _, _, _, e_pad, _ = _scoring_config(E)
    ent_bf16 = ent_emb_f32.astype(jnp.bfloat16)
    ent_t_pad = jnp.pad(ent_bf16.T, ((0, 0), (0, e_pad - E)))
    return ent_bf16, ent_t_pad


# ----------------------------------------------------------------------------
# Pallas kernel 1: applyNonLinear  (lin1 -> relu -> lin2 -> relu -> hidden2rel)
# ----------------------------------------------------------------------------
def _mlp_kernel(x_ref, w1_ref, w2_ref, w3_ref, b3_ref, out_ref):
    x = x_ref[...].astype(jnp.bfloat16)
    h1 = jnp.maximum(
        jnp.dot(x, w1_ref[...], preferred_element_type=jnp.float32), 0.0)
    h2 = jnp.maximum(
        jnp.dot(h1.astype(jnp.bfloat16), w2_ref[...],
                preferred_element_type=jnp.float32), 0.0)
    out_ref[...] = (
        jnp.dot(h2.astype(jnp.bfloat16), w3_ref[...],
                preferred_element_type=jnp.float32) + b3_ref[...])


def apply_non_linear(x, w1t_bf16, w2t_bf16, w3t_bf16, b3, tile_b=128):
    """x: (B, 2H) f32 -> (B, rel_dim) f32. Weights are pre-cast bf16 (resident)."""
    B, in_dim = x.shape
    mid1, mid2 = w1t_bf16.shape[1], w2t_bf16.shape[1]
    rel_dim = w3t_bf16.shape[1]
    tb = min(tile_b, B)                       # tile batch, weights stay resident
    grid = (_cdiv(B, tb),)
    return pl.pallas_call(
        _mlp_kernel,
        grid=grid,
        in_specs=[
            pl.BlockSpec((tb, in_dim), lambda i: (i, 0)),
            pl.BlockSpec((in_dim, mid1), lambda i: (0, 0)),
            pl.BlockSpec((mid1, mid2), lambda i: (0, 0)),
            pl.BlockSpec((mid2, rel_dim), lambda i: (0, 0)),
            pl.BlockSpec((1, rel_dim), lambda i: (0, 0)),
        ],
        out_specs=pl.BlockSpec((tb, rel_dim), lambda i: (i, 0)),
        out_shape=jax.ShapeDtypeStruct((B, rel_dim), jnp.float32),
        compiler_params=pltpu.CompilerParams(dimension_semantics=("parallel",)),
    )(x, w1t_bf16, w2t_bf16, w3t_bf16, b3)


# ----------------------------------------------------------------------------
# Pallas kernel 2: fused ComplEx scoring + BCE-with-logits(sum) loss.
# ----------------------------------------------------------------------------
def _complex_bce_kernel(s_ref, ent_ref, tail_ref, part_ref, *,
                        tiles_per_part, tile_e, coef, one_minus_ls):
    p = pl.program_id(0)          # parallel split of the entity axis (2 TCs on v7x)
    j = pl.program_id(1)          # sequential tiles within the split

    @pl.when(j == 0)
    def _():
        part_ref[...] = jnp.zeros_like(part_ref)

    # Fused ComplEx score against this entity tile: bf16 MXU, f32 accumulation.
    # ent_ref is (2d, tile_e): canonical (B,K)x(K,N), lane-dense along tile_e.
    x = jnp.dot(s_ref[...], ent_ref[...],
                preferred_element_type=jnp.float32)                 # (B, tile_e)

    # One-hot "hit" rebuilt from tail indices: (1, tile_e) iota vs (B, 1) tails.
    ent_base = (p * tiles_per_part + j) * tile_e
    col = lax.broadcasted_iota(jnp.int32, (1, tile_e), 1)
    hit = col == (tail_ref[...] - ent_base)                          # (B, tile_e)

    # BCE(sigmoid(x), a) with a = (1-ls)*onehot + 1/E, rewritten (stable) as
    #   softplus(-x) + (1 - 1/E)*x - (1-ls)*onehot*x
    sp = jnp.maximum(-x, 0.0) + jnp.log1p(jnp.exp(-jnp.abs(x)))
    elem = sp + coef * x - one_minus_ls * jnp.where(hit, x, 0.0)

    # In-kernel reduction over tile_e: lane-aligned 128-wide static slices
    # (no relayout), accumulated into a lane-dense (B, 128) resident block.
    acc = elem[:, 0:128]
    for t in range(1, tile_e // 128):
        acc = acc + elem[:, t * 128:(t + 1) * 128]
    part_ref[0] = part_ref[0] + acc


def complex_score_bce_loss(score_cat, ent_t_pad, tail_idx, *, num_entities,
                           label_smoothing):
    """score_cat: (B, 2d) f32; ent_t_pad: (2d, e_pad) bf16 (pre-transposed,
    pre-padded, frozen); tail_idx: (B,) int (one target entity per row)."""
    B, twod = score_cat.shape
    n_parallel, tile_e, tiles_per_part, e_pad, is_v7x = _scoring_config(num_entities)
    assert ent_t_pad.shape == (twod, e_pad), (ent_t_pad.shape, (twod, e_pad))

    # Pad batch to a full f32 sublane group; padded rows have zero scores and
    # tail=-1 so every padded element is exactly ln(2) (corrected once below).
    B_pad = max(8, _round_up(B, 8))
    score_b = jnp.pad(score_cat.astype(jnp.bfloat16), ((0, B_pad - B), (0, 0)))
    tail = jnp.pad(tail_idx.reshape(B, 1).astype(jnp.int32),
                   ((0, B_pad - B), (0, 0)), constant_values=-1)

    kernel = functools.partial(
        _complex_bce_kernel,
        tiles_per_part=tiles_per_part, tile_e=tile_e,
        coef=float(1.0 - 1.0 / num_entities),
        one_minus_ls=float(1.0 - label_smoothing))

    ent_map = lambda p, j: (0, p * tiles_per_part + j)
    if tiles_per_part >= 4 and not is_v7x:
        # HBM-bound regime on 1-TC chips: deepen entity-tile buffering.
        ent_spec = pl.BlockSpec((twod, tile_e), ent_map,
                                pipeline_mode=pl.Buffered(3))
        n_ent_bufs = 3
    else:
        ent_spec = pl.BlockSpec((twod, tile_e), ent_map)
        n_ent_bufs = 2

    # VMEM budget from the actual tile choice (includes the (B,tile_e) f32 temps).
    vmem_need = (n_ent_bufs * twod * tile_e * 2      # streamed entity tiles
                 + 4 * B_pad * tile_e * 4            # x / sp / elem temporaries
                 + 2 * B_pad * twod * 2              # resident score block
                 + 2 * B_pad * 128 * 4               # resident partial accumulator
                 + 4 * B_pad * 4)                    # tail indices
    vmem_limit = int(min(max(2 * vmem_need, 16 << 20), 48 << 20))

    cost = pl.CostEstimate(
        flops=2 * B_pad * twod * e_pad,
        transcendentals=2 * B_pad * e_pad,
        bytes_accessed=(twod * e_pad * 2 + B_pad * twod * 2 + B_pad * 4
                        + n_parallel * B_pad * 128 * 4))

    partial = pl.pallas_call(
        kernel,
        grid=(n_parallel, tiles_per_part),
        in_specs=[
            pl.BlockSpec((B_pad, twod), lambda p, j: (0, 0)),
            ent_spec,
            pl.BlockSpec((B_pad, 1), lambda p, j: (0, 0)),
        ],
        out_specs=pl.BlockSpec((1, B_pad, 128), lambda p, j: (p, 0, 0)),
        out_shape=jax.ShapeDtypeStruct((n_parallel, B_pad, 128), jnp.float32),
        compiler_params=pltpu.CompilerParams(
            dimension_semantics=("parallel", "arbitrary"),
            vmem_limit_bytes=vmem_limit),
        cost_estimate=cost,
    )(score_b, ent_t_pad, tail)

    # Each padded (row or column) element contributes exactly softplus(0)=ln(2);
    # subtract the known constant instead of masking per element in-kernel.
    pad_correction = math.log(2.0) * (B_pad * e_pad - B * num_entities)
    return jnp.sum(partial) - jnp.float32(pad_correction)


# ----------------------------------------------------------------------------
# Plain-JAX glue: embeddings, bidirectional LSTM (packed semantics), BatchNorm.
# ----------------------------------------------------------------------------
# TODO(synk): the LSTM recurrence (pack_padded_sequence + nn.LSTM) is inherently
# sequential; it stays in plain JAX (lax.scan) with the input projection hoisted.
def _lstm_direction(x, lengths, w_ih, w_hh, b_ih, b_hh):
    """x: (B, T, Ein). Returns final hidden state per sequence (B, H)."""
    B, T, _ = x.shape
    H = w_hh.shape[1]

    # Hoist the input projection out of the recurrence: one large MXU matmul.
    gates_x = jnp.einsum('bte,ge->btg', x, w_ih) + b_ih + b_hh        # (B, T, 4H)
    mask = (jnp.arange(T)[None, :] < lengths[:, None])                # (B, T)

    def step(carry, inp):
        h, c = carry
        gx_t, m_t = inp                                   # (B, 4H), (B, 1)
        gates = gx_t + h @ w_hh.T                         # gate order i,f,g,o
        i, f, g, o = jnp.split(gates, 4, axis=-1)
        i = jax.nn.sigmoid(i)
        f = jax.nn.sigmoid(f)
        g = jnp.tanh(g)
        o = jax.nn.sigmoid(o)
        c_new = f * c + i * g
        h_new = o * jnp.tanh(c_new)
        h = jnp.where(m_t, h_new, h)
        c = jnp.where(m_t, c_new, c)
        return (h, c), None

    xs = (jnp.transpose(gates_x, (1, 0, 2)),
          jnp.transpose(mask, (1, 0))[:, :, None])
    h0 = jnp.zeros((B, H), jnp.float32)
    c0 = jnp.zeros((B, H), jnp.float32)
    (hT, _), _ = lax.scan(step, (h0, c0), xs)
    return hT


def _reverse_by_length(x, lengths):
    """Reverse each sequence within its valid length (padding irrelevant)."""
    B, T, _ = x.shape
    idx = lengths[:, None] - 1 - jnp.arange(T)[None, :]           # (B, T)
    idx = jnp.clip(idx, 0, T - 1)
    return jnp.take_along_axis(x, idx[:, :, None], axis=1)


def _batchnorm_eval(x, weight, bias, mean, var, eps=1e-5):
    """BatchNorm1d eval mode on (B, C, L) input, channel axis = 1."""
    inv = 1.0 / jnp.sqrt(var + eps)
    return ((x - mean[None, :, None]) * inv[None, :, None]
            * weight[None, :, None] + bias[None, :, None])


# ----------------------------------------------------------------------------
# Full forward pass
# ----------------------------------------------------------------------------
def relation_extractor_forward(params, sentence, p_head, p_tail_idx,
                               question_len, label_smoothing=0.1):
    # 1. word embedding lookup
    embeds = params["word_emb"][sentence]                         # (B, T, Edim)

    # 2. bidirectional LSTM, final hidden of each direction
    h_fwd = _lstm_direction(embeds, question_len,
                            params["w_ih_f"], params["w_hh_f"],
                            params["b_ih_f"], params["b_hh_f"])
    rev = _reverse_by_length(embeds, question_len)
    h_bwd = _lstm_direction(rev, question_len,
                            params["w_ih_b"], params["w_hh_b"],
                            params["b_ih_b"], params["b_hh_b"])
    outputs = jnp.concatenate([h_fwd, h_bwd], axis=-1)            # (B, 2H)

    # 3. applyNonLinear — Pallas fused MLP kernel (weights pre-cast to bf16)
    rel_embedding = apply_non_linear(outputs, params["w1t"], params["w2t"],
                                     params["w3t"], params["b3"])  # (B, 2d)

    # 4. ComplEx head/relation mixing (tiny pointwise math, plain JAX)
    head = params["ent_emb_bf16"][p_head].astype(jnp.float32)     # (B, 2d)
    head = jnp.stack(jnp.split(head, 2, axis=1), axis=1)          # (B, 2, d)
    head = _batchnorm_eval(head, params["bn0_w"], params["bn0_b"],
                           params["bn0_m"], params["bn0_v"])
    # TODO(synk): ent/rel/score dropout are inference no-ops here (eval mode).
    re_head, im_head = head[:, 0, :], head[:, 1, :]
    re_rel, im_rel = jnp.split(rel_embedding, 2, axis=1)

    re_score = re_head * re_rel - im_head * im_rel
    im_score = re_head * im_rel + im_head * re_rel
    score = jnp.stack([re_score, im_score], axis=1)               # (B, 2, d)
    score = _batchnorm_eval(score, params["bn2_w"], params["bn2_b"],
                            params["bn2_m"], params["bn2_v"])
    score_cat = jnp.concatenate([score[:, 0, :], score[:, 1, :]], axis=1)  # (B, 2d)

    # 5. fused scoring matmul + label-smoothed BCE(sum) loss. Streams the
    #    pre-padded, pre-transposed bf16 entity table exactly once per forward.
    num_entities = params["ent_emb_bf16"].shape[0]
    loss = complex_score_bce_loss(score_cat, params["ent_emb_t_pad"], p_tail_idx,
                                  num_entities=num_entities,
                                  label_smoothing=label_smoothing)
    return loss


# ----------------------------------------------------------------------------
# Deterministic parameter construction + example run
# ----------------------------------------------------------------------------
def make_params(key, vocab_size, embedding_dim, hidden_dim, relation_dim_half,
                num_entities, mid1=256, mid2=256):
    relation_dim = 2 * relation_dim_half     # ComplEx multiplier = 2
    ks = jax.random.split(key, 16)
    f32 = jnp.float32
    ent_emb = jax.random.normal(ks[1], (num_entities, relation_dim), f32) * 0.5
    # Frozen entity table: one-time bf16 copy (gathers) + transposed/padded copy
    # (scoring stream). The per-forward pad/cast/transpose is fully hoisted here.
    ent_emb_bf16, ent_emb_t_pad = prepare_entity_table(ent_emb)
    p = {
        "word_emb": jax.random.normal(ks[0], (vocab_size, embedding_dim), f32),
        "ent_emb_bf16": ent_emb_bf16,
        "ent_emb_t_pad": ent_emb_t_pad,
        # LSTM (PyTorch gate order i,f,g,o), forward & backward directions
        "w_ih_f": jax.random.normal(ks[2], (4 * hidden_dim, embedding_dim), f32) * 0.1,
        "w_hh_f": jax.random.normal(ks[3], (4 * hidden_dim, hidden_dim), f32) * 0.1,
        "b_ih_f": jax.random.normal(ks[4], (4 * hidden_dim,), f32) * 0.1,
        "b_hh_f": jax.random.normal(ks[5], (4 * hidden_dim,), f32) * 0.1,
        "w_ih_b": jax.random.normal(ks[6], (4 * hidden_dim, embedding_dim), f32) * 0.1,
        "w_hh_b": jax.random.normal(ks[7], (4 * hidden_dim, hidden_dim), f32) * 0.1,
        "b_ih_b": jax.random.normal(ks[8], (4 * hidden_dim,), f32) * 0.1,
        "b_hh_b": jax.random.normal(ks[9], (4 * hidden_dim,), f32) * 0.1,
        # applyNonLinear weights, stored pre-transposed AND pre-cast to bf16
        # (one-time cast, keeps the pallas_call inputs stable per forward).
        "w1t": (jax.random.normal(ks[10], (2 * hidden_dim, mid1), f32)
                * jnp.sqrt(2.0 / (2 * hidden_dim + mid1))).astype(jnp.bfloat16),
        "w2t": (jax.random.normal(ks[11], (mid1, mid2), f32)
                * jnp.sqrt(2.0 / (mid1 + mid2))).astype(jnp.bfloat16),
        "w3t": (jax.random.normal(ks[12], (mid2, relation_dim), f32)
                * 0.05).astype(jnp.bfloat16),
        "b3":  jax.random.normal(ks[13], (1, relation_dim), f32) * 0.05,
        # BatchNorm1d(2) eval-mode params (ComplEx branch)
        "bn0_w": jnp.array([1.0, 1.1], f32),
        "bn0_b": jnp.array([0.02, -0.03], f32),
        "bn0_m": jnp.array([0.01, -0.02], f32),
        "bn0_v": jnp.array([0.9, 1.1], f32),
        "bn2_w": jnp.array([1.05, 0.95], f32),
        "bn2_b": jnp.array([-0.01, 0.04], f32),
        "bn2_m": jnp.array([0.0, 0.05], f32),
        "bn2_v": jnp.array([1.2, 0.8], f32),
    }
    return p


if __name__ == "__main__":
    key = jax.random.PRNGKey(0)

    # small, module-consistent shapes
    B, T = 2, 8
    vocab_size = 50
    embedding_dim = 32          # word embedding dim (LSTM input)
    hidden_dim = 32             # LSTM hidden; bidirectional concat -> 64
    relation_dim_half = 16      # d; ComplEx relation_dim = 32 = entity emb dim
    num_entities = 512

    params = make_params(key, vocab_size, embedding_dim, hidden_dim,
                         relation_dim_half, num_entities)

    k1, k2, k3 = jax.random.split(jax.random.PRNGKey(0), 3)
    sentence = jax.random.randint(k1, (B, T), 0, vocab_size)       # (B, T) int32
    p_head = jax.random.randint(k2, (B,), 0, num_entities)         # (B,)
    # TODO(synk): reference takes a dense (possibly multi-hot) p_tail; the kernel
    # consumes the equivalent one-hot tail *indices* (one target entity per row).
    p_tail_idx = jax.random.randint(k3, (B,), 0, num_entities)     # (B,)
    question_len = jnp.array([8, 6], dtype=jnp.int32)  # sorted descending (packed)

    fwd = jax.jit(functools.partial(relation_extractor_forward,
                                    label_smoothing=0.1))
    loss = fwd(params, sentence, p_head, p_tail_idx, question_len)
    loss = jax.block_until_ready(loss)
    assert jnp.isfinite(loss)
    print("KERNEL_OK")
</pallas_src>

<mosaic_0001>
module attributes {stable_mosaic.version = 11 : i64} {
  func.func @_mlp_kernel(%arg0: i32, %arg1: memref<2x64xf32, #tpu.memory_space<vmem>>, %arg2: memref<64x256xbf16, #tpu.memory_space<vmem>>, %arg3: memref<256x256xbf16, #tpu.memory_space<vmem>>, %arg4: memref<256x32xbf16, #tpu.memory_space<vmem>>, %arg5: memref<1x32xf32, #tpu.memory_space<vmem>>, %arg6: memref<2x32xf32, #tpu.memory_space<vmem>>) attributes {dimension_semantics = [#tpu.dimension_semantics<parallel>], iteration_bounds = array<i64: 1>, scalar_prefetch = 0 : i64, scratch_operands = 0 : i64, tpu.core_type = #tpu.core_type<tc>, window_params = [{transform_indices = @transform_0, window_bounds = array<i64: 2, 64>}, {pipeline_mode = #tpu.pipeline_mode<synchronous>, transform_indices = @transform_1, window_bounds = array<i64: 64, 256>}, {pipeline_mode = #tpu.pipeline_mode<synchronous>, transform_indices = @transform_2, window_bounds = array<i64: 256, 256>}, {pipeline_mode = #tpu.pipeline_mode<synchronous>, transform_indices = @transform_3, window_bounds = array<i64: 256, 32>}, {pipeline_mode = #tpu.pipeline_mode<synchronous>, transform_indices = @transform_4, window_bounds = array<i64: 1, 32>}, {transform_indices = @transform_5, window_bounds = array<i64: 2, 32>}]} {
    %c0 = arith.constant 0 : index
    %c0_0 = arith.constant 0 : index
    %0 = vector.load %arg1[%c0, %c0_0] : memref<2x64xf32, #tpu.memory_space<vmem>>, vector<2x64xf32>
    %1 = arith.truncf %0 : vector<2x64xf32> to vector<2x64xbf16>
    %c0_1 = arith.constant 0 : index
    %c0_2 = arith.constant 0 : index
    %2 = vector.load %arg2[%c0_1, %c0_2] : memref<64x256xbf16, #tpu.memory_space<vmem>>, vector<64x256xbf16>
    %cst = arith.constant dense<0.000000e+00> : vector<2x256xf32>
    %3 = tpu.matmul %1, %2, %cst {dimension_numbers = #tpu.dot_dimension_numbers<[1], [0], [0], [1], [0, 0, 1, 1], [], []>} : vector<2x64xbf16>, vector<64x256xbf16>, vector<2x256xf32> -> vector<2x256xf32>
    %cst_3 = arith.constant 0.000000e+00 : f32
    %4 = vector.broadcast %cst_3 : f32 to vector<2x256xf32>
    %5 = arith.maximumf %3, %4 : vector<2x256xf32>
    %6 = arith.truncf %5 : vector<2x256xf32> to vector<2x256xbf16>
    %c0_4 = arith.constant 0 : index
    %c0_5 = arith.constant 0 : index
    %7 = vector.load %arg3[%c0_4, %c0_5] : memref<256x256xbf16, #tpu.memory_space<vmem>>, vector<256x256xbf16>
    %cst_6 = arith.constant dense<0.000000e+00> : vector<2x256xf32>
    %8 = tpu.matmul %6, %7, %cst_6 {dimension_numbers = #tpu.dot_dimension_numbers<[1], [0], [0], [1], [0, 0, 1, 1], [], []>} : vector<2x256xbf16>, vector<256x256xbf16>, vector<2x256xf32> -> vector<2x256xf32>
    %cst_7 = arith.constant 0.000000e+00 : f32
    %9 = vector.broadcast %cst_7 : f32 to vector<2x256xf32>
    %10 = arith.maximumf %8, %9 : vector<2x256xf32>
    %11 = arith.truncf %10 : vector<2x256xf32> to vector<2x256xbf16>
    %c0_8 = arith.constant 0 : index
    %c0_9 = arith.constant 0 : index
    %12 = vector.load %arg4[%c0_8, %c0_9] : memref<256x32xbf16, #tpu.memory_space<vmem>>, vector<256x32xbf16>
    %cst_10 = arith.constant dense<0.000000e+00> : vector<2x32xf32>
    %13 = tpu.matmul %11, %12, %cst_10 {dimension_numbers = #tpu.dot_dimension_numbers<[1], [0], [0], [1], [0, 0, 1, 1], [], []>} : vector<2x256xbf16>, vector<256x32xbf16>, vector<2x32xf32> -> vector<2x32xf32>
    %c0_11 = arith.constant 0 : index
    %c0_12 = arith.constant 0 : index
    %14 = vector.load %arg5[%c0_11, %c0_12] : memref<1x32xf32, #tpu.memory_space<vmem>>, vector<1x32xf32>
    %15 = vector.broadcast %14 : vector<1x32xf32> to vector<2x32xf32>
    %16 = arith.addf %13, %15 : vector<2x32xf32>
    %c0_13 = arith.constant 0 : index
    %c0_14 = arith.constant 0 : index
    %17 = vector.load %arg6[%c0_13, %c0_14] : memref<2x32xf32, #tpu.memory_space<vmem>>, vector<2x32xf32>
    tpu.vector_store %arg6[%c0_13, %c0_14], %16 {strides = array<i32>} : memref<2x32xf32, #tpu.memory_space<vmem>>, vector<2x32xf32>,
    return
  }
  func.func @transform_0(%arg0: i32) -> (i32, i32) {
    %c0_i32 = arith.constant 0 : i32
    %c0_i32_0 = arith.constant 0 : i32
    return %arg0, %c0_i32 : i32, i32
  }
  func.func @transform_1(%arg0: i32) -> (i32, i32) {
    %c0_i32 = arith.constant 0 : i32
    %c0_i32_0 = arith.constant 0 : i32
    %c0_i32_1 = arith.constant 0 : i32
    return %c0_i32, %c0_i32_0 : i32, i32
  }
  func.func @transform_2(%arg0: i32) -> (i32, i32) {
    %c0_i32 = arith.constant 0 : i32
    %c0_i32_0 = arith.constant 0 : i32
    %c0_i32_1 = arith.constant 0 : i32
    return %c0_i32, %c0_i32_0 : i32, i32
  }
  func.func @transform_3(%arg0: i32) -> (i32, i32) {
    %c0_i32 = arith.constant 0 : i32
    %c0_i32_0 = arith.constant 0 : i32
    %c0_i32_1 = arith.constant 0 : i32
    return %c0_i32, %c0_i32_0 : i32, i32
  }
  func.func @transform_4(%arg0: i32) -> (i32, i32) {
    %c0_i32 = arith.constant 0 : i32
    %c0_i32_0 = arith.constant 0 : i32
    %c0_i32_1 = arith.constant 0 : i32
    return %c0_i32, %c0_i32_0 : i32, i32
  }
  func.func @transform_5(%arg0: i32) -> (i32, i32) {
    %c0_i32 = arith.constant 0 : i32
    %c0_i32_0 = arith.constant 0 : i32
    return %arg0, %c0_i32 : i32, i32
  }
}

module attributes {stable_mosaic.version = 11 : i64} {
  func.func @_complex_bce_kernel(%arg0: i32, %arg1: i32, %arg2: memref<8x32xbf16, #tpu.memory_space<vmem>>, %arg3: memref<32x512xbf16, #tpu.memory_space<vmem>>, %arg4: memref<8x1xi32, #tpu.memory_space<vmem>>, %arg5: memref<1x8x128xf32, #tpu.memory_space<vmem>>) attributes {dimension_semantics = [#tpu.dimension_semantics<parallel>, #tpu.dimension_semantics<arbitrary>], iteration_bounds = array<i64: 1, 1>, scalar_prefetch = 0 : i64, scratch_operands = 0 : i64, tpu.core_type = #tpu.core_type<tc>, window_params = [{pipeline_mode = #tpu.pipeline_mode<synchronous>, transform_indices = @transform_0, window_bounds = array<i64: 8, 32>}, {transform_indices = @transform_1, window_bounds = array<i64: 32, 512>}, {pipeline_mode = #tpu.pipeline_mode<synchronous>, transform_indices = @transform_2, window_bounds = array<i64: 8, 1>}, {transform_indices = @transform_3, window_bounds = array<i64: 1, 8, 128>}]} {
    %c0_i32 = arith.constant 0 : i32
    %0 = arith.cmpi eq, %arg1, %c0_i32 : i32
    %1 = arith.extui %0 : i1 to i32
    %c0_i32_0 = arith.constant 0 : i32
    %2 = arith.cmpi ne, %1, %c0_i32_0 : i32
    scf.if %2 {
      %cst_18 = arith.constant 0.000000e+00 : f32
      %47 = vector.broadcast %cst_18 : f32 to vector<1x8x128xf32>
      %c0_19 = arith.constant 0 : index
      %c0_20 = arith.constant 0 : index
      %c0_21 = arith.constant 0 : index
      %48 = vector.load %arg5[%c0_19, %c0_20, %c0_21] : memref<1x8x128xf32, #tpu.memory_space<vmem>>, vector<1x8x128xf32>
      tpu.vector_store %arg5[%c0_19, %c0_20, %c0_21], %47 {strides = array<i32>} : memref<1x8x128xf32, #tpu.memory_space<vmem>>, vector<1x8x128xf32>,
    } else {
    }
    %c0 = arith.constant 0 : index
    %c0_1 = arith.constant 0 : index
    %3 = vector.load %arg2[%c0, %c0_1] : memref<8x32xbf16, #tpu.memory_space<vmem>>, vector<8x32xbf16>
    %c0_2 = arith.constant 0 : index
    %c0_3 = arith.constant 0 : index
    %4 = vector.load %arg3[%c0_2, %c0_3] : memref<32x512xbf16, #tpu.memory_space<vmem>>, vector<32x512xbf16>
    %cst = arith.constant dense<0.000000e+00> : vector<8x512xf32>
    %5 = tpu.matmul %3, %4, %cst {dimension_numbers = #tpu.dot_dimension_numbers<[1], [0], [0], [1], [0, 0, 1, 1], [], []>} : vector<8x32xbf16>, vector<32x512xbf16>, vector<8x512xf32> -> vector<8x512xf32>
    %c1_i32 = arith.constant 1 : i32
    %6 = arith.muli %arg0, %c1_i32 : i32
    %7 = arith.addi %6, %arg1 : i32
    %c512_i32 = arith.constant 512 : i32
    %8 = arith.muli %7, %c512_i32 : i32
    %9 = tpu.iota {dimensions = array<i32: 1>} : vector<1x512xi32>
    %c0_4 = arith.constant 0 : index
    %c0_5 = arith.constant 0 : index
    %10 = vector.load %arg4[%c0_4, %c0_5] : memref<8x1xi32, #tpu.memory_space<vmem>>, vector<8x1xi32>
    %11 = vector.broadcast %8 : i32 to vector<8x1xi32>
    %12 = arith.subi %10, %11 : vector<8x1xi32>
    %13 = vector.broadcast %9 : vector<1x512xi32> to vector<8x512xi32>
    %14 = vector.broadcast %12 : vector<8x1xi32> to vector<8x512xi32>
    %15 = arith.cmpi eq, %13, %14 : vector<8x512xi32>
    %cst_6 = arith.constant 0.000000e+00 : f32
    %16 = vector.broadcast %cst_6 : f32 to vector<8x512xf32>
    %17 = arith.subf %16, %5 : vector<8x512xf32>
    %cst_7 = arith.constant 0.000000e+00 : f32
    %18 = vector.broadcast %cst_7 : f32 to vector<8x512xf32>
    %19 = arith.maximumf %17, %18 : vector<8x512xf32>
    %20 = math.absf %5 : vector<8x512xf32>
    %cst_8 = arith.constant 0.000000e+00 : f32
    %21 = vector.broadcast %cst_8 : f32 to vector<8x512xf32>
    %22 = arith.subf %21, %20 : vector<8x512xf32>
    %23 = math.exp %22 : vector<8x512xf32>
    %24 = math.log1p %23 : vector<8x512xf32>
    %25 = arith.addf %19, %24 : vector<8x512xf32>
    %cst_9 = arith.constant 0.998046875 : f32
    %26 = vector.broadcast %cst_9 : f32 to vector<8x512xf32>
    %27 = arith.mulf %26, %5 : vector<8x512xf32>
    %28 = arith.addf %25, %27 : vector<8x512xf32>
    %cst_10 = arith.constant 0.000000e+00 : f32
    %29 = vector.broadcast %cst_10 : f32 to vector<8x512xf32>
    %30 = arith.select %15, %5, %29 : vector<8x512xi1>, vector<8x512xf32>
    %cst_11 = arith.constant 0.899999976 : f32
    %31 = vector.broadcast %cst_11 : f32 to vector<8x512xf32>
    %32 = arith.mulf %31, %30 : vector<8x512xf32>
    %33 = arith.subf %28, %32 : vector<8x512xf32>
    %34 = vector.extract_strided_slice %33 {offsets = [0, 0], sizes = [8, 128], strides = [1, 1]} : vector<8x512xf32> to vector<8x128xf32>
    %35 = vector.extract_strided_slice %33 {offsets = [0, 128], sizes = [8, 128], strides = [1, 1]} : vector<8x512xf32> to vector<8x128xf32>
    %36 = arith.addf %34, %35 : vector<8x128xf32>
    %37 = vector.extract_strided_slice %33 {offsets = [0, 256], sizes = [8, 128], strides = [1, 1]} : vector<8x512xf32> to vector<8x128xf32>
    %38 = arith.addf %36, %37 : vector<8x128xf32>
    %39 = vector.extract_strided_slice %33 {offsets = [0, 384], sizes = [8, 128], strides = [1, 1]} : vector<8x512xf32> to vector<8x128xf32>
    %40 = arith.addf %38, %39 : vector<8x128xf32>
    %c0_12 = arith.constant 0 : index
    %c0_13 = arith.constant 0 : index
    %c0_14 = arith.constant 0 : index
    %41 = vector.load %arg5[%c0_12, %c0_13, %c0_14] : memref<1x8x128xf32, #tpu.memory_space<vmem>>, vector<1x8x128xf32>
    %42 = vector.shape_cast %41 : vector<1x8x128xf32> to vector<8x128xf32>
    %43 = arith.addf %42, %40 : vector<8x128xf32>
    %c0_15 = arith.constant 0 : index
    %c0_16 = arith.constant 0 : index
    %c0_17 = arith.constant 0 : index
    %44 = vector.load %arg5[%c0_15, %c0_16, %c0_17] : memref<1x8x128xf32, #tpu.memory_space<vmem>>, vector<1x8x128xf32>
    %45 = vector.shape_cast %44 : vector<1x8x128xf32> to vector<8x128xf32>
    %46 = vector.shape_cast %43 : vector<8x128xf32> to vector<1x8x128xf32>
    tpu.vector_store %arg5[%c0_15, %c0_16, %c0_17], %46 {strides = array<i32>} : memref<1x8x128xf32, #tpu.memory_space<vmem>>, vector<1x8x128xf32>,
    return
  }
  func.func @transform_0(%arg0: i32, %arg1: i32) -> (i32, i32) {
    %c0_i32 = arith.constant 0 : i32
    %c0_i32_0 = arith.constant 0 : i32
    %c0_i32_1 = arith.constant 0 : i32
    return %c0_i32, %c0_i32_0 : i32, i32
  }
  func.func @transform_1(%arg0: i32, %arg1: i32) -> (i32, i32) {
    %c1_i32 = arith.constant 1 : i32
    %0 = arith.muli %arg0, %c1_i32 : i32
    %1 = arith.addi %0, %arg1 : i32
    %c0_i32 = arith.constant 0 : i32
    %c0_i32_0 = arith.constant 0 : i32
    return %c0_i32, %1 : i32, i32
  }
  func.func @transform_2(%arg0: i32, %arg1: i32) -> (i32, i32) {
    %c0_i32 = arith.constant 0 : i32
    %c0_i32_0 = arith.constant 0 : i32
    %c0_i32_1 = arith.constant 0 : i32
    return %c0_i32, %c0_i32_0 : i32, i32
  }
  func.func @transform_3(%arg0: i32, %arg1: i32) -> (i32, i32, i32) {
    %c0_i32 = arith.constant 0 : i32
    %c0_i32_0 = arith.constant 0 : i32
    %c0_i32_1 = arith.constant 0 : i32
    return %arg0, %c0_i32, %c0_i32_0 : i32, i32, i32
  }
}

</mosaic_0001>

<bundles_post_ra>
// kernel: custom-call.4
= control target key start
LH: loop header
LB: loop body
LE: loop exit
PB: predicated region body
PF: predicated region fallthrough
CT: control target
= control target key end

     0   :  { %s6_s0 = inlined_call_operand.vmem [shape: f32[2,32], index: 0, kind: output, shape index: {}]  }

// kernel: relation_extractor_forward.3
= control target key start
LH: loop header
LB: loop body
LE: loop exit
PB: predicated region body
PF: predicated region fallthrough
CT: control target
= control target key end

     0   :  { %v335_v1 = vmov 0   ;;  %vm91_vm0 = vcmask 261120   ;;  %v179_v31 = vlaneseq  ;;  %s419_s1 = inlined_call_operand.vmem [shape: bf16[32,512], index: 1, kind: input, shape index: {}]   ;;  %s420_s2 = inlined_call_operand.vmem [shape: s32[8,1], index: 2, kind: input, shape index: {}]   ;;  %s421_s0 = inlined_call_operand.vmem [shape: bf16[8,32], index: 0, kind: input, shape index: {}]   ;;  %s422_s3 = inlined_call_operand.vmem [shape: f32[1,8,128], index: 3, kind: output, shape index: {}]  }
   0x1   :  { %v307_v0 = vld [vmem:[%s419_s1 + $0x4] ss:$16 sps:$4 sm:$0xff]   ;;  %127 = vmatprep.mubr.bf16.mxu0 %v335_v1  ;;  %168 = vmatprep.mubr.bf16.mxu1 %v335_v1  ;;  %v309_v2 = vld [vmem:[%s419_s1 + $0xc] ss:$16 sps:$4 sm:$0xff]   ;;  %v311_v3 = vld [vmem:[%s419_s1] ss:$16 sps:$4 sm:$0xff]  }
   0x2   :  { %306 = vset.pattern.permute.xlu0 %v335_v1  ;;  %95 = vmatprep.subr.bf16.mxu0 %v307_v0  ;;  %v312_v4 = vld [vmem:[%s419_s1 + $0x8] ss:$16 sps:$4 sm:$0xff]   ;;  %v313_v5 = vld [vmem:[%s419_s1 + $0x24] ss:$16 sps:$4 sm:$0xff]   ;;  %v315_v6 = vld [vmem:[%s419_s1 + $0x2c] ss:$16 sps:$4 sm:$0xff]  }
   0x3   :  { %136 = vmatprep.subr.bf16.mxu1 %v309_v2  ;;  %96 = vmatpush1.bf16.msra.mxu0 %v311_v3  ;;  %v317_v7 = vld [vmem:[%s419_s1 + $0x20] ss:$16 sps:$4 sm:$0xff]   ;;  %v318_v8 = vld [vmem:[%s419_s1 + $0x28] ss:$16 sps:$4 sm:$0xff]   ;;  %v180_v37 = vand.u32 127, %v179_v31 }
   0x4   :  { %137 = vmatpush1.bf16.msra.mxu1 %v312_v4  ;;  %97 = vmatprep.subr.bf16.mxu0 %v313_v5  ;;  %v184_v9 = vld [vmem:[%s420_s2] sm:$0xff] }
   0x5   :  { %138 = vmatprep.subr.bf16.mxu1 %v315_v6  ;;  %188 = vperm.xlu0 %306, %v184_v9   ;;  %v42_v10 = vld [vmem:[%s421_s0] sm:$0xf]  ;;  %v181_v41 = vadd.s32 128, %v180_v37  ;;  %v182_v42 = vadd.s32 256, %v180_v37  ;;  %v183_v46 = vadd.s32 384, %v180_v37 }
   0x7   :  { %98 = vmatpush1.bf16.msra.mxu0 %v317_v7 }
   0x8   :  { %139 = vmatpush1.bf16.msra.mxu1 %v318_v8 }
   0xa   :  { %302 = vmatmul.mubr.msk.bf16.vlgmr.msra.gmra.mrb[0].mxu0 %vm91_vm0, %v42_v10 }
   0xb   :  { %303 = vmatmul.mubr.msk.bf16.vlgmr.msra.gmra.mrb[0].mxu1 %vm91_vm0, %v42_v10 }
  0x84   :  { %v395_v43 = vpop.permute.xlu0 %188 }
  0x85   :  { %vm190_vm1 = vcmp.eq.s32.totalorder %v180_v37, %v395_v43  ;;  %vm191_vm2 = vcmp.eq.s32.totalorder %v181_v41, %v395_v43  ;;  %vm192_vm3 = vcmp.eq.s32.totalorder %v182_v42, %v395_v43  ;;  %vm193_vm4 = vcmp.eq.s32.totalorder %v183_v46, %v395_v43 }
  0xdd   :  { %v129_v11 = vpop.f32.mrb[0].mxu0 }
  0xde   :  { %v386_v12 = vpop.f32.mrb[0].mxu1  ;;  %v202_v13 = vand.u32 2147483647, %v129_v11  ;;  %v388_v14 = vpop.f32.mrb[1].mxu0  ;;  %v194_v47 = vsub.f32 0.0, %v129_v11  ;;  %v258_v53 = vmul.f32 0.9980469, %v129_v11 }
  0xdf   :  { %v204_v15 = vand.u32 2147483647, %v386_v12  ;;  %v391_v17 = vpop.f32.mrb[1].mxu1  ;;  %v133_v18 = vpop.f32.mrb[2].mxu0  ;;  %v203_v20 = vand.u32 2147483647, %v388_v14 }
  0xe0   :  { %v206_v16 = vsub.f32 0.0, %v202_v13  ;;  %v174_v22 = vpop.f32.mrb[2].mxu1  ;;  %v205_v25 = vand.u32 2147483647, %v391_v17  ;;  %v134_v26 = vpop.f32.mrb[3].mxu0  ;;  %v196_v50 = vsub.f32 0.0, %v386_v12 }
  0xe1   :  { %v208_v19 = vsub.f32 0.0, %v204_v15  ;;  %v207_v24 = vsub.f32 0.0, %v203_v20  ;;  %v175_v27 = vpop.f32.mrb[3].mxu1  ;;  %v198_v57 = vmax.f32 %v194_v47, 0.0  ;;  %v266_v58 = vsel %vm190_vm1, %v129_v11, 0.0 }
  0xe2   :  { %v210_v21 = vmul.f32 1.442695, %v206_v16  ;;  %v209_v29 = vsub.f32 0.0, %v205_v25  ;;  %v195_v59 = vsub.f32 0.0, %v388_v14  ;;  %v200_v0 = vmax.f32 %v196_v50, 0.0 }
  0xe3   :  { %v214_v23 = vmul.f32 1.442695, %v208_v19  ;;  %v212_v28 = vmul.f32 1.442695, %v207_v24  ;;  %v197_v4 = vsub.f32 0.0, %v391_v17  ;;  %v267_v18 = vsel %vm191_vm2, %v388_v14, 0.0 }
  0xe4   :  { %319 = vpow2.f32 %v210_v21  ;;  %v216_v30 = vmul.f32 1.442695, %v209_v29  ;;  %v199_v16 = vmax.f32 %v195_v59, 0.0  ;;  %v270_v21 = vmul.f32 0.9, %v266_v58 }
  0xe5   :  { %321 = vpow2.f32 %v214_v23  ;;  %v260_v22 = vmul.f32 0.9980469, %v386_v12  ;;  %v259_v25 = vmul.f32 0.9980469, %v388_v14  ;;  %v271_v29 = vmul.f32 0.9, %v267_v18 }
  0xe6   :  { %323 = vpow2.f32 %v212_v28  ;;  %v268_v28 = vsel %vm192_vm3, %v386_v12, 0.0  ;;  %v269_v14 = vsel %vm193_vm4, %v391_v17, 0.0 }
  0xe7   :  { %325 = vpow2.f32 %v216_v30  ;;  %v201_v30 = vmax.f32 %v197_v4, 0.0  ;;  %v272_v37 = vmul.f32 0.9, %v268_v28  ;;  %v273_v12 = vmul.f32 0.9, %v269_v14 }
  0xee   :  { %v320_v32 = vpop.eup %319 }
  0xef   :  { %v322_v33 = vpop.eup %321  ;;  %v218_v34 = vadd.f32 1.0, %v320_v32  ;;  %v221_v40 = vmul.f32 -0.5, %v320_v32  ;;  %v224_v51 = vand.u32 2147483647, %v320_v32 }
  0xf0   :  { %v236_v35 = vadd.f32 1.0, %v322_v33  ;;  %v324_v36 = vpop.eup %323  ;;  %v239_v44 = vmul.f32 -0.5, %v322_v33  ;;  %v242_v54 = vand.u32 2147483647, %v322_v33 }
  0xf1   :  { %327 = vlog2.f32 %v218_v34  ;;  %v227_v38 = vadd.f32 1.0, %v324_v36  ;;  %v326_v39 = vpop.eup %325  ;;  %v230_v48 = vmul.f32 -0.5, %v324_v36  ;;  %v222_v49 = vadd.f32 1.0, %v221_v40 }
  0xf2   :  { %329 = vlog2.f32 %v236_v35  ;;  %v245_v45 = vadd.f32 1.0, %v326_v39  ;;  %v240_v52 = vadd.f32 1.0, %v239_v44  ;;  %v248_v55 = vmul.f32 -0.5, %v326_v39 }
  0xf3   :  { %331 = vlog2.f32 %v227_v38  ;;  %v231_v60 = vadd.f32 1.0, %v230_v48  ;;  %v223_v63 = vmul.f32 %v320_v32, %v222_v49  ;;  %v233_v1 = vand.u32 2147483647, %v324_v36 }
  0xf4   :  { %333 = vlog2.f32 %v245_v45  ;;  %vm225_vm5 = vcmp.lt.f32.partialorder %v224_v51, 0.0004427343  ;;  %v241_v3 = vmul.f32 %v322_v33, %v240_v52  ;;  %vm243_vm6 = vcmp.lt.f32.partialorder %v242_v54, 0.0004427343 }
  0xf5   :  { %v249_v7 = vadd.f32 1.0, %v248_v55  ;;  %v251_v8 = vand.u32 2147483647, %v326_v39  ;;  %v232_v13 = vmul.f32 %v324_v36, %v231_v60  ;;  %vm234_vm7 = vcmp.lt.f32.partialorder %v233_v1, 0.0004427343 }
  0xf6   :  { %v261_v36 = vmul.f32 0.9980469, %v391_v17 }
  0xf7   :  { %v250_v27 = vmul.f32 %v326_v39, %v249_v7  ;;  %vm252_vm8 = vcmp.lt.f32.partialorder %v251_v8, 0.0004427343 }
  0xfb   :  { %v328_v56 = vpop.eup %327 }
  0xfc   :  { %v330_v61 = vpop.eup %329  ;;  %v220_v62 = vmul.f32 0.6931472, %v328_v56 }
  0xfd   :  { %v238_v2 = vmul.f32 0.6931472, %v330_v61  ;;  %v332_v5 = vpop.eup %331 }
  0xfe   :  { %v226_v6 = vsel %vm225_vm5, %v223_v63, %v220_v62  ;;  %v229_v11 = vmul.f32 0.6931472, %v332_v5  ;;  %v334_v19 = vpop.eup %333 }
  0xff   :  { %v254_v9 = vadd.f32 %v226_v6, %v198_v57  ;;  %v244_v10 = vsel %vm243_vm6, %v241_v3, %v238_v2  ;;  %v247_v26 = vmul.f32 0.6931472, %v334_v19 }
 0x100   :  { %v256_v15 = vadd.f32 %v244_v10, %v200_v0  ;;  %v235_v23 = vsel %vm234_vm7, %v232_v13, %v229_v11 }
 0x101   :  { %v262_v20 = vadd.f32 %v258_v53, %v254_v9  ;;  %v255_v24 = vadd.f32 %v235_v23, %v199_v16  ;;  %v253_v34 = vsel %vm252_vm8, %v250_v27, %v247_v26 }
 0x102   :  { %v264_v32 = vadd.f32 %v260_v22, %v256_v15  ;;  %v257_v35 = vadd.f32 %v253_v34, %v201_v30 }
 0x103   :  { %v274_v31 = vsub.f32 %v262_v20, %v270_v21  ;;  %v263_v33 = vadd.f32 %v259_v25, %v255_v24 }
 0x104   :  { %v265_v39 = vadd.f32 %v261_v36, %v257_v35  ;;  %v276_v40 = vsub.f32 %v264_v32, %v272_v37 }
 0x105   :  { %v275_v38 = vsub.f32 %v263_v33, %v271_v29 }
 0x106   :  { %v277_v42 = vsub.f32 %v265_v39, %v273_v12 }
 0x107   :  { %v278_v41 = vadd.f32 %v275_v38, %v274_v31 }
 0x109   :  { %v279_v44 = vadd.f32 %v278_v41, %v276_v40 }
 0x10b   :  { %v280_v45 = vadd.f32 %v279_v44, %v277_v42 }
 0x10d   :  { %283 = vst [vmem:[%s422_s3] sm:$0xff] %v280_v45 }

// kernel: relation_extractor_forward.2
= control target key start
LH: loop header
LB: loop body
LE: loop exit
PB: predicated region body
PF: predicated region fallthrough
CT: control target
= control target key end

     0   :  { %v695_v1 = vmov 0   ;;  %vm71_vm0 = vcmask 523264   ;;  %vm532_vm1 = vcmask 254976   ;;  %s903_s1 = inlined_call_operand.vmem [shape: bf16[64,256], index: 1, kind: input, shape index: {}]   ;;  %s904_s2 = inlined_call_operand.vmem [shape: bf16[256,256], index: 2, kind: input, shape index: {}]   ;;  %s905_s0 = inlined_call_operand.vmem [shape: f32[2,64], index: 0, kind: input, shape index: {}]   ;;  %s906_s3 = inlined_call_operand.vmem [shape: bf16[256,32], index: 3, kind: input, shape index: {}]   ;;  %s907_s4 = inlined_call_operand.vmem [shape: f32[1,32], index: 4, kind: input, shape index: {}]   ;;  %s908_s5 = inlined_call_operand.vmem [shape: f32[2,32], index: 5, kind: output, shape index: {}]  }
   0x1   :  { %v619_v0 = vld [vmem:[%s903_s1 + $0x4] ss:$8 sps:$4 sm:$0xff]   ;;  %107 = vmatprep.mubr.bf16.mxu0 %v695_v1  ;;  %v621_v2 = vld [vmem:[%s903_s1] ss:$8 sps:$4 sm:$0xff]   ;;  %v622_v3 = vld [vmem:[%s903_s1 + $0x14] ss:$8 sps:$4 sm:$0xff]  }
   0x2   :  { %75 = vmatprep.subr.bf16.mxu0 %v619_v0  ;;  %v624_v4 = vld [vmem:[%s903_s1 + $0x10] ss:$8 sps:$4 sm:$0xff]   ;;  %v625_v5 = vld [vmem:[%s903_s1 + $0x24] ss:$8 sps:$4 sm:$0xff]   ;;  %v627_v6 = vld [vmem:[%s903_s1 + $0x20] ss:$8 sps:$4 sm:$0xff]  }
   0x3   :  { %76 = vmatpush1.bf16.msra.mxu0 %v621_v2  ;;  %v631_v7 = vld [vmem:[%s904_s2 + $0x4] ss:$8 sps:$4 sm:$0xff]   ;;  %v633_v8 = vld [vmem:[%s904_s2] ss:$8 sps:$4 sm:$0xff]   ;;  %v634_v9 = vld [vmem:[%s904_s2 + $0x14] ss:$8 sps:$4 sm:$0xff]  }
   0x4   :  { %77 = vmatprep.subr.bf16.mxu0 %v622_v3  ;;  %v628_v10 = vld [vmem:[%s903_s1 + $0x34] ss:$8 sps:$4 sm:$0xff]   ;;  %312 = vmatprep.subr.bf16.mxu1 %v631_v7  ;;  %v636_v11 = vld [vmem:[%s904_s2 + $0x10] ss:$8 sps:$4 sm:$0xff]   ;;  %v637_v13 = vld [vmem:[%s904_s2 + $0x24] ss:$8 sps:$4 sm:$0xff]  }
   0x5   :  { %313 = vmatpush1.bf16.msra.mxu1 %v633_v8  ;;  %v630_v12 = vld [vmem:[%s903_s1 + $0x30] ss:$8 sps:$4 sm:$0xff]   ;;  %v21_v14 = vld [vmem:[%s905_s0] sm:$0x3]  ;;  %v640_v17 = vld [vmem:[%s904_s2 + $0x34] ss:$8 sps:$4 sm:$0xff]  }
   0x6   :  { %314 = vmatprep.subr.bf16.mxu1 %v634_v9  ;;  %v639_v15 = vld [vmem:[%s904_s2 + $0x20] ss:$8 sps:$4 sm:$0xff]   ;;  %v22_v16 = vpack.c.bf16 %v21_v14, %v21_v14  ;;  %v642_v18 = vld [vmem:[%s904_s2 + $0x30] ss:$8 sps:$4 sm:$0xff]   ;;  %v643_v19 = vld [vmem:[%s904_s2 + $0x44] ss:$8 sps:$4 sm:$0xff]  }
   0x7   :  { %78 = vmatpush1.bf16.msra.mxu0 %v624_v4  ;;  %v645_v20 = vld [vmem:[%s904_s2 + $0x40] ss:$8 sps:$4 sm:$0xff]   ;;  %v646_v21 = vld [vmem:[%s904_s2 + $0x54] ss:$8 sps:$4 sm:$0xff]   ;;  %v648_v22 = vld [vmem:[%s904_s2 + $0x50] ss:$8 sps:$4 sm:$0xff]  }
   0x8   :  { %79 = vmatprep.subr.bf16.mxu0 %v625_v5  ;;  %v649_v23 = vld [vmem:[%s904_s2 + $0x64] ss:$8 sps:$4 sm:$0xff]   ;;  %v651_v24 = vld [vmem:[%s904_s2 + $0x60] ss:$8 sps:$4 sm:$0xff]   ;;  %v652_v25 = vld [vmem:[%s904_s2 + $0x74] ss:$8 sps:$4 sm:$0xff]  }
   0x9   :  { %315 = vmatpush1.bf16.msra.mxu1 %v636_v11  ;;  %v654_v26 = vld [vmem:[%s904_s2 + $0x70] ss:$8 sps:$4 sm:$0xff]   ;;  %v655_v27 = vld [vmem:[%s904_s2 + $0x84] ss:$8 sps:$4 sm:$0xff]   ;;  %v657_v28 = vld [vmem:[%s904_s2 + $0x80] ss:$8 sps:$4 sm:$0xff]  }
   0xa   :  { %316 = vmatprep.subr.bf16.mxu1 %v637_v13  ;;  %v658_v29 = vld [vmem:[%s904_s2 + $0x94] ss:$8 sps:$4 sm:$0xff]   ;;  %v660_v30 = vld [vmem:[%s904_s2 + $0x90] ss:$8 sps:$4 sm:$0xff]   ;;  %v661_v31 = vld [vmem:[%s904_s2 + $0xa4] ss:$8 sps:$4 sm:$0xff]  }
   0xb   :  { %80 = vmatpush1.bf16.msra.mxu0 %v627_v6  ;;  %v663_v32 = vld [vmem:[%s904_s2 + $0xa0] ss:$8 sps:$4 sm:$0xff]   ;;  %v664_v33 = vld [vmem:[%s904_s2 + $0xb4] ss:$8 sps:$4 sm:$0xff]   ;;  %v666_v34 = vld [vmem:[%s904_s2 + $0xb0] ss:$8 sps:$4 sm:$0xff]  }
   0xc   :  { %81 = vmatprep.subr.bf16.mxu0 %v628_v10  ;;  %v667_v35 = vld [vmem:[%s904_s2 + $0xc4] ss:$8 sps:$4 sm:$0xff]   ;;  %v669_v36 = vld [vmem:[%s904_s2 + $0xc0] ss:$8 sps:$4 sm:$0xff]   ;;  %v670_v37 = vld [vmem:[%s904_s2 + $0xd4] ss:$8 sps:$4 sm:$0xff]  }
   0xd   :  { %317 = vmatpush1.bf16.msra.mxu1 %v639_v15  ;;  %v672_v38 = vld [vmem:[%s904_s2 + $0xd0] ss:$8 sps:$4 sm:$0xff]   ;;  %v673_v39 = vld [vmem:[%s904_s2 + $0xe4] ss:$8 sps:$4 sm:$0xff]   ;;  %v675_v40 = vld [vmem:[%s904_s2 + $0xe0] ss:$8 sps:$4 sm:$0xff]  }
   0xe   :  { %318 = vmatprep.subr.bf16.mxu1 %v640_v17  ;;  %v676_v41 = vld [vmem:[%s904_s2 + $0xf4] ss:$8 sps:$4 sm:$0xff]   ;;  %v678_v42 = vld [vmem:[%s904_s2 + $0xf0] ss:$8 sps:$4 sm:$0xff]   ;;  %v679_v43 = vld [vmem:[%s906_s3 + $0x40] sm:$0xff]  }
   0xf   :  { %82 = vmatpush1.bf16.msra.mxu0 %v630_v12  ;;  %v680_v44 = vld [vmem:[%s906_s3] sm:$0xff]   ;;  %v681_v45 = vld [vmem:[%s906_s3 + $0x48] sm:$0xff]   ;;  %v683_v47 = vld [vmem:[%s906_s3 + $0x50] sm:$0xff]  }
  0x10   :  { %596 = vmatprep.subr.bf16.mxu0 %v679_v43  ;;  %v682_v46 = vld [vmem:[%s906_s3 + $0x8] sm:$0xff]   ;;  %v684_v48 = vld [vmem:[%s906_s3 + $0x10] sm:$0xff]   ;;  %v685_v49 = vld [vmem:[%s906_s3 + $0x58] sm:$0xff]  }
  0x11   :  { %319 = vmatpush1.bf16.msra.mxu1 %v642_v18  ;;  %v686_v50 = vld [vmem:[%s906_s3 + $0x18] sm:$0xff]   ;;  %v687_v51 = vld [vmem:[%s906_s3 + $0x60] sm:$0xff]   ;;  %v689_v53 = vld [vmem:[%s906_s3 + $0x68] sm:$0xff]  }
  0x12   :  { %546 = vmatmul.mubr.msk.bf16.vlgmr.msra.gmra.mrb[0].mxu0 %vm71_vm0, %v22_v16  ;;  %320 = vmatprep.subr.bf16.mxu1 %v643_v19  ;;  %v688_v52 = vld [vmem:[%s906_s3 + $0x20] sm:$0xff]   ;;  %v690_v54 = vld [vmem:[%s906_s3 + $0x28] sm:$0xff]   ;;  %v691_v55 = vld [vmem:[%s906_s3 + $0x70] sm:$0xff]  }
  0x13   :  { %597 = vmatpush3.bf16.msra.mxu0 %v680_v44  ;;  %v692_v0 = vld [vmem:[%s906_s3 + $0x30] sm:$0xff]   ;;  %v693_v1 = vld [vmem:[%s906_s3 + $0x78] sm:$0xff]   ;;  %v579_v12 = vld [vmem:[%s907_s4] ss:$0 sm:$0xff] }
  0x14   :  { %598 = vmatprep.subr.bf16.mxu0 %v681_v45  ;;  %v694_v2 = vld [vmem:[%s906_s3 + $0x38] sm:$0xff]  }
  0x15   :  { %321 = vmatpush1.bf16.msra.mxu1 %v645_v20 }
  0x16   :  { %322 = vmatprep.subr.bf16.mxu1 %v646_v21 }
  0x17   :  { %599 = vmatpush3.bf16.msra.mxu0 %v682_v46 }
  0x18   :  { %600 = vmatprep.subr.bf16.mxu0 %v683_v47 }
  0x19   :  { %323 = vmatpush1.bf16.msra.mxu1 %v648_v22 }
  0x1a   :  { %324 = vmatprep.subr.bf16.mxu1 %v649_v23 }
  0x1b   :  { %601 = vmatpush3.bf16.msra.mxu0 %v684_v48 }
  0x1c   :  { %602 = vmatprep.subr.bf16.mxu0 %v685_v49 }
  0x1d   :  { %325 = vmatpush1.bf16.msra.mxu1 %v651_v24 }
  0x1e   :  { %326 = vmatprep.subr.bf16.mxu1 %v652_v25 }
  0x1f   :  { %603 = vmatpush3.bf16.msra.mxu0 %v686_v50 }
  0x20   :  { %604 = vmatprep.subr.bf16.mxu0 %v687_v51 }
  0x21   :  { %327 = vmatpush1.bf16.msra.mxu1 %v654_v26 }
  0x22   :  { %328 = vmatprep.subr.bf16.mxu1 %v655_v27 }
  0x23   :  { %605 = vmatpush3.bf16.msra.mxu0 %v688_v52 }
  0x24   :  { %606 = vmatprep.subr.bf16.mxu0 %v689_v53 }
  0x25   :  { %329 = vmatpush1.bf16.msra.mxu1 %v657_v28 }
  0x26   :  { %330 = vmatprep.subr.bf16.mxu1 %v658_v29 }
  0x27   :  { %607 = vmatpush3.bf16.msra.mxu0 %v690_v54 }
  0x28   :  { %608 = vmatprep.subr.bf16.mxu0 %v691_v55 }
  0x29   :  { %331 = vmatpush1.bf16.msra.mxu1 %v660_v30 }
  0x2a   :  { %332 = vmatprep.subr.bf16.mxu1 %v661_v31 }
  0x2b   :  { %609 = vmatpush3.bf16.msra.mxu0 %v692_v0 }
  0x2c   :  { %610 = vmatprep.subr.bf16.mxu0 %v693_v1 }
  0x2d   :  { %333 = vmatpush1.bf16.msra.mxu1 %v663_v32 }
  0x2e   :  { %334 = vmatprep.subr.bf16.mxu1 %v664_v33 }
  0x2f   :  { %611 = vmatpush3.bf16.msra.mxu0 %v694_v2 }
  0x31   :  { %335 = vmatpush1.bf16.msra.mxu1 %v666_v34 }
  0x32   :  { %336 = vmatprep.subr.bf16.mxu1 %v667_v35 }
  0x35   :  { %337 = vmatpush1.bf16.msra.mxu1 %v669_v36 }
  0x36   :  { %338 = vmatprep.subr.bf16.mxu1 %v670_v37 }
  0x39   :  { %339 = vmatpush1.bf16.msra.mxu1 %v672_v38 }
  0x3a   :  { %340 = vmatprep.subr.bf16.mxu1 %v673_v39 }
  0x3d   :  { %341 = vmatpush1.bf16.msra.mxu1 %v675_v40 }
  0x3e   :  { %342 = vmatprep.subr.bf16.mxu1 %v676_v41 }
  0x41   :  { %343 = vmatpush1.bf16.msra.mxu1 %v678_v42 }
  0xe5   :  { %v109_v56 = vpop.f32.mrb[0].mxu0 }
  0xe6   :  { %v116_v57 = vmax.f32 %v109_v56, 0.0  ;;  %v111_v58 = vpop.f32.mrb[1].mxu0 }
  0xe7   :  { %v113_v59 = vpop.f32.mrb[2].mxu0  ;;  %v117_v60 = vmax.f32 %v111_v58, 0.0 }
  0xe8   :  { %v114_v61 = vpop.f32.mrb[3].mxu0  ;;  %v118_v63 = vpack.c.bf16 %v116_v57, %v116_v57 }
  0xe9   :  { %v119_v62 = vpack.c.bf16 %v117_v60, %v117_v60 }
  0xeb   :  { %344 = vmatprep.mubr.bf16.mxu1 %v119_v62 }
  0xec   :  { %345 = vmatmul.mubr.bf16.vlgmr.msra.gmra.mrb[0].mxu1 %v118_v63 }
 0x1bf   :  { %v346_v3 = vpop.f32.mrb[0].mxu1 }
 0x1c0   :  { %v353_v4 = vmax.f32 %v346_v3, 0.0  ;;  %v348_v5 = vpop.f32.mrb[1].mxu1 }
 0x1c1   :  { %v354_v6 = vmax.f32 %v348_v5, 0.0  ;;  %v350_v7 = vpop.f32.mrb[2].mxu1 }
 0x1c2   :  { %v351_v8 = vpop.f32.mrb[3].mxu1  ;;  %v355_v10 = vpack.c.bf16 %v353_v4, %v353_v4 }
 0x1c3   :  { %v356_v9 = vpack.c.bf16 %v354_v6, %v354_v6 }
 0x1c5   :  { %524 = vmatprep.mubr.bf16.mxu0 %v356_v9 }
 0x1c6   :  { %525 = vmatmul.mubr.bf16.vlgmr.msra.gmra.mrb[4].mxu0 %v355_v10 }
 0x299   :  { %v612_v11 = vpop.f32.mrb[4].mxu0 }
 0x29a   :  { %v613_v13 = vpop.f32.mrb[5].mxu0 }
 0x29b   :  { %v614_v14 = vadd.f32 %v613_v13, %v612_v11  ;;  %v615_v15 = vpop.f32.mrb[6].mxu0 }
 0x29c   :  { %v616_v16 = vpop.f32.mrb[7].mxu0 }
 0x29d   :  { %v527_v17 = vadd.f32 %v614_v14, %v579_v12 }
 0x29f   :  { %533 = vst.msk [vmem:[%s908_s5] sm:$0x3] %vm532_vm1, %v527_v17 }

</bundles_post_ra>
